<compile_context>
chip_gen: v5e
topology: v5e:2x2
jax: 0.10.0
libtpu: 0.0.40
codegen_flags: <defaults>
</compile_context>

<pallas_src>
import functools

import jax
import jax.numpy as jnp
from jax import lax
from jax.experimental import pallas as pl
from jax.experimental.pallas import tpu as pltpu

# ----------------------------- model config ---------------------------------
CONV_KERNELS = [10, 3, 3, 3, 3, 2, 2]
CONV_STRIDES = [1, 1, 1, 1, 1, 1, 5]     # module patches stride=(1,) everywhere, last=(5,)
CONV_DIM = 512
HIDDEN = 768
NUM_LAYERS = 12
NUM_HEADS = 12
HEAD_DIM = HIDDEN // NUM_HEADS
FFN_DIM = 3072
POS_KERNEL = 128
POS_GROUPS = 16
GROUP_CH = HIDDEN // POS_GROUPS          # 48
NUM_CLASSES = 5
LN_EPS = 1e-5
BF16 = jnp.bfloat16
VMEM_LIMIT = 32 * 1024 * 1024


# ----------------------------- small helpers --------------------------------
def _round_up(x, m):
    return (x + m - 1) // m * m


def _gelu(x):
    # tanh-approx GELU (Mosaic-friendly transcendentals).
    # TODO(synk): exact erf GELU if bit-exactness vs torch is required.
    c = 0.7978845608028654  # sqrt(2/pi)
    return 0.5 * x * (1.0 + jnp.tanh(c * (x + 0.044715 * x * x * x)))


def _im2col_1d(x, k, s):
    """x: (B, C, L) -> patches (B*T, C*k), T with T = (L - k)//s + 1."""
    B, C, L = x.shape
    T = (L - k) // s + 1
    idx = jnp.arange(T)[:, None] * s + jnp.arange(k)[None, :]       # (T, k)
    patches = x[:, :, idx]                                          # (B, C, T, k)
    patches = jnp.transpose(patches, (0, 2, 1, 3)).reshape(B * T, C * k)
    return patches, T


# ----------------------------- Pallas kernels -------------------------------
def _mm_kernel(a_ref, w_ref, b_ref, o_ref, *, activation):
    y = jnp.dot(a_ref[...], w_ref[...], preferred_element_type=jnp.float32)
    y = y + b_ref[...]
    if activation == "gelu":
        y = _gelu(y)
    o_ref[...] = y


@functools.partial(jax.jit, static_argnames=("activation",))
def pallas_mm(a, w, bias, activation="none"):
    """y = act(a @ w + bias).  a:(M,K)->bf16, w:(K,N) bf16, bias:(N,) f32."""
    M, K = a.shape
    N = w.shape[1]
    return pl.pallas_call(
        functools.partial(_mm_kernel, activation=activation),
        out_shape=jax.ShapeDtypeStruct((M, N), jnp.float32),
        grid_spec=pltpu.PrefetchScalarGridSpec(
            num_scalar_prefetch=0,
            grid=(1,),
            in_specs=[
                pl.BlockSpec((M, K), lambda i: (0, 0)),
                pl.BlockSpec((K, N), lambda i: (0, 0)),
                pl.BlockSpec((1, N), lambda i: (0, 0)),
            ],
            out_specs=pl.BlockSpec((M, N), lambda i: (0, 0)),
        ),
        compiler_params=pltpu.CompilerParams(
            dimension_semantics=("arbitrary",),
            vmem_limit_bytes=VMEM_LIMIT),
    )(a.astype(BF16), w, bias.reshape(1, N))


def _mm_res_ln_kernel(a_ref, w_ref, b_ref, r_ref, g_ref, bb_ref, o_ref, *, eps):
    y = jnp.dot(a_ref[...], w_ref[...], preferred_element_type=jnp.float32)
    y = y + b_ref[...] + r_ref[...]
    mu = jnp.mean(y, axis=-1, keepdims=True)
    var = jnp.mean((y - mu) ** 2, axis=-1, keepdims=True)
    o_ref[...] = (y - mu) * lax.rsqrt(var + eps) * g_ref[...] + bb_ref[...]


@jax.jit
def pallas_mm_res_ln(a, w, bias, res, gamma, beta):
    """LayerNorm(res + a @ w + bias) with affine gamma/beta (single N block)."""
    M, K = a.shape
    N = w.shape[1]
    return pl.pallas_call(
        functools.partial(_mm_res_ln_kernel, eps=LN_EPS),
        out_shape=jax.ShapeDtypeStruct((M, N), jnp.float32),
        grid_spec=pltpu.PrefetchScalarGridSpec(
            num_scalar_prefetch=0,
            grid=(1,),
            in_specs=[
                pl.BlockSpec((M, K), lambda i: (0, 0)),
                pl.BlockSpec((K, N), lambda i: (0, 0)),
                pl.BlockSpec((1, N), lambda i: (0, 0)),
                pl.BlockSpec((M, N), lambda i: (0, 0)),
                pl.BlockSpec((1, N), lambda i: (0, 0)),
                pl.BlockSpec((1, N), lambda i: (0, 0)),
            ],
            out_specs=pl.BlockSpec((M, N), lambda i: (0, 0)),
        ),
        compiler_params=pltpu.CompilerParams(
            dimension_semantics=("arbitrary",),
            vmem_limit_bytes=VMEM_LIMIT),
    )(a.astype(BF16), w, bias.reshape(1, N), res,
      gamma.reshape(1, N), beta.reshape(1, N))


def _ln_mm_kernel(x_ref, g_ref, bb_ref, w_ref, b_ref, o_ref, *, eps):
    x = x_ref[...]
    mu = jnp.mean(x, axis=-1, keepdims=True)
    var = jnp.mean((x - mu) ** 2, axis=-1, keepdims=True)
    xn = (x - mu) * lax.rsqrt(var + eps) * g_ref[...] + bb_ref[...]
    o_ref[...] = jnp.dot(xn.astype(jnp.bfloat16), w_ref[...],
                         preferred_element_type=jnp.float32) + b_ref[...]


@jax.jit
def pallas_ln_linear(x, gamma, beta, w, bias):
    """Fused LayerNorm(x) @ w + bias (feature projection)."""
    M, K = x.shape
    N = w.shape[1]
    return pl.pallas_call(
        functools.partial(_ln_mm_kernel, eps=LN_EPS),
        out_shape=jax.ShapeDtypeStruct((M, N), jnp.float32),
        grid_spec=pltpu.PrefetchScalarGridSpec(
            num_scalar_prefetch=0,
            grid=(1,),
            in_specs=[
                pl.BlockSpec((M, K), lambda i: (0, 0)),
                pl.BlockSpec((1, K), lambda i: (0, 0)),
                pl.BlockSpec((1, K), lambda i: (0, 0)),
                pl.BlockSpec((K, N), lambda i: (0, 0)),
                pl.BlockSpec((1, N), lambda i: (0, 0)),
            ],
            out_specs=pl.BlockSpec((M, N), lambda i: (0, 0)),
        ),
        compiler_params=pltpu.CompilerParams(
            dimension_semantics=("arbitrary",),
            vmem_limit_bytes=VMEM_LIMIT),
    )(x, gamma.reshape(1, K), beta.reshape(1, K), w, bias.reshape(1, N))


def _add_ln_kernel(x_ref, r_ref, g_ref, b_ref, o_ref, *, eps):
    y = x_ref[...] + r_ref[...]
    mu = jnp.mean(y, axis=-1, keepdims=True)
    var = jnp.mean((y - mu) ** 2, axis=-1, keepdims=True)
    o_ref[...] = (y - mu) * lax.rsqrt(var + eps) * g_ref[...] + b_ref[...]


@jax.jit
def pallas_add_layernorm(x, r, gamma, beta):
    M, D = x.shape
    return pl.pallas_call(
        functools.partial(_add_ln_kernel, eps=LN_EPS),
        out_shape=jax.ShapeDtypeStruct((M, D), jnp.float32),
        grid_spec=pltpu.PrefetchScalarGridSpec(
            num_scalar_prefetch=0,
            grid=(1,),
            in_specs=[
                pl.BlockSpec((M, D), lambda i: (0, 0)),
                pl.BlockSpec((M, D), lambda i: (0, 0)),
                pl.BlockSpec((1, D), lambda i: (0, 0)),
                pl.BlockSpec((1, D), lambda i: (0, 0)),
            ],
            out_specs=pl.BlockSpec((M, D), lambda i: (0, 0)),
        ),
        compiler_params=pltpu.CompilerParams(
            dimension_semantics=("arbitrary",),
            vmem_limit_bytes=VMEM_LIMIT),
    )(x, r, gamma.reshape(1, D), beta.reshape(1, D))


def _pos_conv_kernel(a_ref, w_ref, b_ref, o_ref):
    # a_ref: (Mp, gc*128) bf16 slice of the full im2col for this group's channels
    # w_ref: (1, gc*128, gc) bf16, b_ref: (1, 1, gc) f32
    y = jnp.dot(a_ref[...], w_ref[0], preferred_element_type=jnp.float32) + b_ref[0]
    o_ref[0] = _gelu(y)


@jax.jit
def pallas_pos_conv(patches, w_slab, b_slab):
    """Grouped positional conv as one gridded matmul; group on a parallel axis."""
    Mp = patches.shape[0]
    G, KG, gc = w_slab.shape
    return pl.pallas_call(
        _pos_conv_kernel,
        out_shape=jax.ShapeDtypeStruct((G, Mp, gc), jnp.float32),
        grid_spec=pltpu.PrefetchScalarGridSpec(
            num_scalar_prefetch=0,
            grid=(G,),
            in_specs=[
                pl.BlockSpec((Mp, KG), lambda g: (0, g)),
                pl.BlockSpec((1, KG, gc), lambda g: (g, 0, 0)),
                pl.BlockSpec((1, 1, gc), lambda g: (g, 0, 0)),
            ],
            out_specs=pl.BlockSpec((1, Mp, gc), lambda g: (g, 0, 0)),
        ),
        compiler_params=pltpu.CompilerParams(
            dimension_semantics=("parallel",),
            vmem_limit_bytes=VMEM_LIMIT),
    )(patches, w_slab, b_slab)


def _attention_kernel(t_ref, q_ref, k_ref, v_ref, o_ref):
    t_valid = t_ref[0]                          # runtime sequence length (SMEM)
    q = q_ref[0]                                # (H, Tp, Dh) bf16, q pre-scaled
    k = k_ref[0]
    v = v_ref[0]
    s = jnp.einsum("hqd,hkd->hqk", q, k, preferred_element_type=jnp.float32)
    col = lax.broadcasted_iota(jnp.int32, s.shape, 2)
    s = jnp.where(col < t_valid, s, -1e30)      # mask padded keys (f32)
    m = jnp.max(s, axis=-1, keepdims=True)
    p = jnp.exp(s - m)
    p = p * pl.reciprocal(jnp.sum(p, axis=-1, keepdims=True), approx=True)
    ctx = jnp.einsum("hqk,hkd->hqd", p.astype(jnp.bfloat16), v,
                     preferred_element_type=jnp.float32)
    o_ref[0] = ctx.astype(o_ref.dtype)


@jax.jit
def pallas_attention(t_arr, q, k, v):
    """q,k,v: (B, H, Tp, Dh) bf16; all heads of one batch element per grid step."""
    B, H, Tp, Dh = q.shape
    spec = pl.BlockSpec((1, H, Tp, Dh), lambda b, t: (b, 0, 0, 0))
    return pl.pallas_call(
        _attention_kernel,
        out_shape=jax.ShapeDtypeStruct((B, H, Tp, Dh), jnp.bfloat16),
        grid_spec=pltpu.PrefetchScalarGridSpec(
            num_scalar_prefetch=1,
            grid=(B,),
            in_specs=[spec, spec, spec],
            out_specs=spec,
        ),
        compiler_params=pltpu.CompilerParams(
            dimension_semantics=("parallel",),
            vmem_limit_bytes=VMEM_LIMIT),
    )(t_arr, q, k, v)


def _head_kernel(x_ref, w_ref, b_ref, o_ref, *, n_valid):
    logits = jnp.dot(x_ref[...], w_ref[...],
                     preferred_element_type=jnp.float32) + b_ref[...]
    col = lax.broadcasted_iota(jnp.int32, logits.shape, 1)
    valid = col < n_valid
    masked = jnp.where(valid, logits, -1e30)
    m = jnp.max(masked, axis=-1, keepdims=True)
    e = jnp.where(valid, jnp.exp(masked - m), 0.0)
    lse = m + jnp.log(jnp.sum(e, axis=-1, keepdims=True))
    o_ref[...] = logits - lse


@jax.jit
def pallas_head_logsoftmax(x, w_pad, b_pad):
    """Fused fc(768->5) + log_softmax (f32). w/b padded to 128 classes."""
    M, K = x.shape
    Np = w_pad.shape[1]
    out = pl.pallas_call(
        functools.partial(_head_kernel, n_valid=NUM_CLASSES),
        out_shape=jax.ShapeDtypeStruct((M, Np), jnp.float32),
        grid_spec=pltpu.PrefetchScalarGridSpec(
            num_scalar_prefetch=0,
            grid=(1,),
            in_specs=[
                pl.BlockSpec((M, K), lambda i: (0, 0)),
                pl.BlockSpec((K, Np), lambda i: (0, 0)),
                pl.BlockSpec((1, Np), lambda i: (0, 0)),
            ],
            out_specs=pl.BlockSpec((M, Np), lambda i: (0, 0)),
        ),
        compiler_params=pltpu.CompilerParams(
            dimension_semantics=("arbitrary",),
            vmem_limit_bytes=VMEM_LIMIT),
    )(x.astype(BF16), w_pad, b_pad)
    return out[:, :NUM_CLASSES]


# ----------------------------- parameters -----------------------------------
def init_params(key):
    keys = iter(jax.random.split(key, 512))

    def nrm(shape, std=0.02):
        return std * jax.random.normal(next(keys), shape, dtype=jnp.float32)

    p = {}
    conv_cfg = [(CONV_DIM, 1, 10)] + [(CONV_DIM, CONV_DIM, 3)] * 4 + \
               [(CONV_DIM, CONV_DIM, 2)] * 2
    p["conv_w"] = [nrm(s) for s in conv_cfg]                 # conv_bias=False
    p["gn_g"] = jnp.ones((CONV_DIM,), jnp.float32)
    p["gn_b"] = jnp.zeros((CONV_DIM,), jnp.float32)
    p["fp_ln_g"] = jnp.ones((CONV_DIM,), jnp.float32)
    p["fp_ln_b"] = jnp.zeros((CONV_DIM,), jnp.float32)
    p["fp_w"] = nrm((CONV_DIM, HIDDEN))
    p["fp_b"] = jnp.zeros((HIDDEN,), jnp.float32)
    p["pos_conv_w"] = nrm((HIDDEN, GROUP_CH, POS_KERNEL))
    p["pos_conv_b"] = jnp.zeros((HIDDEN,), jnp.float32)
    p["enc_ln_g"] = jnp.ones((HIDDEN,), jnp.float32)
    p["enc_ln_b"] = jnp.zeros((HIDDEN,), jnp.float32)
    layers = []
    for _ in range(NUM_LAYERS):
        layers.append(dict(
            q_w=nrm((HIDDEN, HIDDEN)), q_b=jnp.zeros((HIDDEN,), jnp.float32),
            k_w=nrm((HIDDEN, HIDDEN)), k_b=jnp.zeros((HIDDEN,), jnp.float32),
            v_w=nrm((HIDDEN, HIDDEN)), v_b=jnp.zeros((HIDDEN,), jnp.float32),
            o_w=nrm((HIDDEN, HIDDEN)), o_b=jnp.zeros((HIDDEN,), jnp.float32),
            ln1_g=jnp.ones((HIDDEN,), jnp.float32),
            ln1_b=jnp.zeros((HIDDEN,), jnp.float32),
            ff_w1=nrm((HIDDEN, FFN_DIM)), ff_b1=jnp.zeros((FFN_DIM,), jnp.float32),
            ff_w2=nrm((FFN_DIM, HIDDEN)), ff_b2=jnp.zeros((HIDDEN,), jnp.float32),
            ln2_g=jnp.ones((HIDDEN,), jnp.float32),
            ln2_b=jnp.zeros((HIDDEN,), jnp.float32),
        ))
    p["layers"] = layers
    p["fc_w"] = nrm((HIDDEN, NUM_CLASSES))
    p["fc_b"] = jnp.zeros((NUM_CLASSES,), jnp.float32)
    return p


def prepare_params(raw):
    """One-time weight prep: reshapes/transposes/QKV concat/bf16 casts."""
    p = {
        "conv_w_mat": [w.reshape(w.shape[0], -1).T.astype(BF16)
                       for w in raw["conv_w"]],               # (cin*k, cout)
        "conv_zero_b": jnp.zeros((CONV_DIM,), jnp.float32),
        "gn_g": raw["gn_g"], "gn_b": raw["gn_b"],
        "fp_ln_g": raw["fp_ln_g"], "fp_ln_b": raw["fp_ln_b"],
        "fp_w": raw["fp_w"].astype(BF16), "fp_b": raw["fp_b"],
        "enc_ln_g": raw["enc_ln_g"], "enc_ln_b": raw["enc_ln_b"],
    }
    # per-group pos-conv weight slab: (G, gc*128, gc) matching im2col columns c*128+j
    w = raw["pos_conv_w"].reshape(POS_GROUPS, GROUP_CH, GROUP_CH, POS_KERNEL)
    p["pos_w_slab"] = jnp.transpose(w, (0, 2, 3, 1)).reshape(
        POS_GROUPS, GROUP_CH * POS_KERNEL, GROUP_CH).astype(BF16)
    p["pos_b_slab"] = raw["pos_conv_b"].reshape(POS_GROUPS, 1, GROUP_CH)

    scale = HEAD_DIM ** -0.5
    layers = []
    for lp in raw["layers"]:
        layers.append(dict(
            w_qkv=jnp.concatenate([lp["q_w"] * scale, lp["k_w"], lp["v_w"]],
                                  axis=1).astype(BF16),        # (768, 2304)
            b_qkv=jnp.concatenate([lp["q_b"] * scale, lp["k_b"], lp["v_b"]]),
            o_w=lp["o_w"].astype(BF16), o_b=lp["o_b"],
            ln1_g=lp["ln1_g"], ln1_b=lp["ln1_b"],
            ff_w1=lp["ff_w1"].astype(BF16), ff_b1=lp["ff_b1"],
            ff_w2=lp["ff_w2"].astype(BF16), ff_b2=lp["ff_b2"],
            ln2_g=lp["ln2_g"], ln2_b=lp["ln2_b"],
        ))
    p["layers"] = layers

    pad_n = 128
    p["fc_w_pad"] = jnp.pad(raw["fc_w"],
                            ((0, 0), (0, pad_n - NUM_CLASSES))).astype(BF16)
    p["fc_b_pad"] = jnp.pad(raw["fc_b"], (0, pad_n - NUM_CLASSES)).reshape(1, pad_n)
    return p


# ----------------------------- forward pass ---------------------------------
def conv_feature_extractor(params, x):
    """7-layer conv stack; GELU fused in the matmul epilogue (layers >= 1)."""
    B, L = x.shape
    h = x[:, None, :].astype(jnp.float32)                     # (B, 1, L) NCW
    max_rows = _round_up(B * (L - CONV_KERNELS[0] + 1), 8)    # one M bucket -> 3 kernel shapes
    for i, (k_, s_) in enumerate(zip(CONV_KERNELS, CONV_STRIDES)):
        # TODO(synk): k=3 layers could avoid im2col via shift-and-matmul (manual DMA).
        patches, T = _im2col_1d(h, k_, s_)                    # (B*T, cin*k)
        M = patches.shape[0]
        patches = jnp.pad(patches, ((0, max_rows - M), (0, 0)))
        act = "none" if i == 0 else "gelu"
        y = pallas_mm(patches, params["conv_w_mat"][i], params["conv_zero_b"],
                      activation=act)
        y = y[:M].reshape(B, T, CONV_DIM)
        if i == 0:
            # GroupNorm(512 groups, 512 ch) == per-channel norm over time (affine)
            mu = jnp.mean(y, axis=1, keepdims=True)
            var = jnp.mean((y - mu) ** 2, axis=1, keepdims=True)
            y = (y - mu) * lax.rsqrt(var + LN_EPS)
            y = y * params["gn_g"][None, None, :] + params["gn_b"][None, None, :]
            y = _gelu(y)
        h = jnp.transpose(y, (0, 2, 1))                       # (B, 512, T)
    return h


@functools.partial(jax.jit, static_argnames=("B", "Tp"))
def encoder_layer(flat, t_arr, lp, B, Tp):
    """One post-LN transformer layer on padded (B*Tp, 768) activations."""
    # fused QKV projection (q weights/bias pre-scaled by head_dim**-0.5)
    qkv = pallas_mm(flat, lp["w_qkv"], lp["b_qkv"])           # (B*Tp, 2304) f32
    qkv = qkv.reshape(B, Tp, 3, NUM_HEADS, HEAD_DIM)
    qkv = jnp.transpose(qkv, (2, 0, 3, 1, 4)).astype(BF16)    # (3, B, H, Tp, Dh)
    ctx = pallas_attention(t_arr, qkv[0], qkv[1], qkv[2])     # (B, H, Tp, Dh) bf16
    ctx = jnp.transpose(ctx, (0, 2, 1, 3)).reshape(B * Tp, HIDDEN)
    # attention out-proj fused with residual add + LayerNorm
    flat = pallas_mm_res_ln(ctx, lp["o_w"], lp["o_b"], flat, lp["ln1_g"], lp["ln1_b"])
    # FFN: up-proj with fused bias+GELU, down-proj fused with residual + LayerNorm
    ff = pallas_mm(flat, lp["ff_w1"], lp["ff_b1"], activation="gelu")
    flat = pallas_mm_res_ln(ff, lp["ff_w2"], lp["ff_b2"], flat, lp["ln2_g"], lp["ln2_b"])
    return flat


def model_forward(params, x, mask=None):
    # TODO(synk): attention_mask path not implemented (module is called with mask=None)
    del mask
    B, L = x.shape

    # --- conv feature extractor ---
    h = conv_feature_extractor(params, x)                     # (B, 512, T)
    T = h.shape[2]
    Tp = _round_up(max(T, 8), 8)                              # minimal pad, carried throughout

    # --- feature projection: fused LayerNorm(512) + Linear(512,768) (dropout = id) ---
    feats = jnp.transpose(h, (0, 2, 1))                       # (B, T, 512)
    feats = jnp.pad(feats, ((0, 0), (0, Tp - T), (0, 0))).reshape(B * Tp, CONV_DIM)
    hidden = pallas_ln_linear(feats, params["fp_ln_g"], params["fp_ln_b"],
                              params["fp_w"], params["fp_b"])  # (B*Tp, 768) f32

    # --- positional conv embedding: single gridded grouped-conv matmul + fused GELU ---
    hs = hidden.reshape(B, Tp, HIDDEN)[:, :T, :]
    hp = jnp.pad(jnp.transpose(hs, (0, 2, 1)),
                 ((0, 0), (0, 0), (POS_KERNEL // 2, POS_KERNEL // 2))).astype(BF16)
    pos_patches, Tc = _im2col_1d(hp, POS_KERNEL, 1)           # (B*Tc, 768*128) bf16
    Mc = pos_patches.shape[0]
    Mcp = _round_up(Mc, 8)
    pos_patches = jnp.pad(pos_patches, ((0, Mcp - Mc), (0, 0)))
    pos_g = pallas_pos_conv(pos_patches, params["pos_w_slab"], params["pos_b_slab"])
    pos = jnp.transpose(pos_g, (1, 0, 2)).reshape(Mcp, HIDDEN)[:Mc]
    pos = pos.reshape(B, Tc, HIDDEN)[:, :T, :]                # same-pad removes last step
    pos = jnp.pad(pos, ((0, 0), (0, Tp - T), (0, 0))).reshape(B * Tp, HIDDEN)

    # --- encoder: (hidden + pos_emb) -> LayerNorm (dropout = id), 12 post-LN layers ---
    flat = pallas_add_layernorm(hidden, pos, params["enc_ln_g"], params["enc_ln_b"])
    t_arr = jnp.full((1,), T, dtype=jnp.int32)                # runtime seq-len scalar
    for lp in params["layers"]:
        flat = encoder_layer(flat, t_arr, lp, B=B, Tp=Tp)

    # --- head: dropout(id) -> fc(768,5) -> log_softmax(float32) -> transpose(0,1) ---
    logp = pallas_head_logsoftmax(flat, params["fc_w_pad"], params["fc_b_pad"])
    logp = logp.reshape(B, Tp, NUM_CLASSES)[:, :T, :]
    return jnp.transpose(logp, (1, 0, 2))                     # (T, B, 5)


# ----------------------------- main ------------------------------------------
if __name__ == "__main__":
    key = jax.random.PRNGKey(0)
    pkey, xkey = jax.random.split(key)
    params = prepare_params(init_params(pkey))

    B, L = 2, 120                       # small raw-waveform input (batch, samples)
    x = jax.random.normal(xkey, (B, L), dtype=jnp.float32)

    out = model_forward(params, x)
    out = jax.block_until_ready(out)

    # expected output length after the stride-patched conv stack
    T = L
    for k_, s_ in zip(CONV_KERNELS, CONV_STRIDES):
        T = (T - k_) // s_ + 1
    assert out.shape == (T, B, NUM_CLASSES), out.shape
    assert out.dtype == jnp.float32
    # rows are valid log-probabilities and finite
    assert bool(jnp.all(jnp.abs(jnp.exp(out).sum(-1) - 1.0) < 1e-3))
    assert bool(jnp.all(jnp.isfinite(out)))

    print("KERNEL_OK")
</pallas_src>

<mosaic_0001>
module attributes {stable_mosaic.version = 11 : i64} {
  func.func @_mm_kernel(%arg0: i32, %arg1: memref<224x10xbf16, #tpu.memory_space<vmem>>, %arg2: memref<10x512xbf16, #tpu.memory_space<vmem>>, %arg3: memref<1x512xf32, #tpu.memory_space<vmem>>, %arg4: memref<224x512xf32, #tpu.memory_space<vmem>>) attributes {dimension_semantics = [#tpu.dimension_semantics<arbitrary>], iteration_bounds = array<i64: 1>, scalar_prefetch = 0 : i64, scratch_operands = 0 : i64, tpu.core_type = #tpu.core_type<tc>, window_params = [{pipeline_mode = #tpu.pipeline_mode<synchronous>, transform_indices = @transform_0, window_bounds = array<i64: 224, 10>}, {pipeline_mode = #tpu.pipeline_mode<synchronous>, transform_indices = @transform_1, window_bounds = array<i64: 10, 512>}, {pipeline_mode = #tpu.pipeline_mode<synchronous>, transform_indices = @transform_2, window_bounds = array<i64: 1, 512>}, {pipeline_mode = #tpu.pipeline_mode<synchronous>, transform_indices = @transform_3, window_bounds = array<i64: 224, 512>}]} {
    %c0 = arith.constant 0 : index
    %c0_0 = arith.constant 0 : index
    %0 = vector.load %arg1[%c0, %c0_0] : memref<224x10xbf16, #tpu.memory_space<vmem>>, vector<224x10xbf16>
    %c0_1 = arith.constant 0 : index
    %c0_2 = arith.constant 0 : index
    %1 = vector.load %arg2[%c0_1, %c0_2] : memref<10x512xbf16, #tpu.memory_space<vmem>>, vector<10x512xbf16>
    %cst = arith.constant dense<0.000000e+00> : vector<224x512xf32>
    %2 = tpu.matmul %0, %1, %cst {dimension_numbers = #tpu.dot_dimension_numbers<[1], [0], [0], [1], [0, 0, 1, 1], [], []>} : vector<224x10xbf16>, vector<10x512xbf16>, vector<224x512xf32> -> vector<224x512xf32>
    %c0_3 = arith.constant 0 : index
    %c0_4 = arith.constant 0 : index
    %3 = vector.load %arg3[%c0_3, %c0_4] : memref<1x512xf32, #tpu.memory_space<vmem>>, vector<1x512xf32>
    %4 = vector.broadcast %3 : vector<1x512xf32> to vector<224x512xf32>
    %5 = arith.addf %2, %4 : vector<224x512xf32>
    %c0_5 = arith.constant 0 : index
    %c0_6 = arith.constant 0 : index
    %6 = vector.load %arg4[%c0_5, %c0_6] : memref<224x512xf32, #tpu.memory_space<vmem>>, vector<224x512xf32>
    tpu.vector_store %arg4[%c0_5, %c0_6], %5 {strides = array<i32>} : memref<224x512xf32, #tpu.memory_space<vmem>>, vector<224x512xf32>,
    return
  }
  func.func @transform_0(%arg0: i32) -> (i32, i32) {
    %c0_i32 = arith.constant 0 : i32
    %c0_i32_0 = arith.constant 0 : i32
    %c0_i32_1 = arith.constant 0 : i32
    return %c0_i32, %c0_i32_0 : i32, i32
  }
  func.func @transform_1(%arg0: i32) -> (i32, i32) {
    %c0_i32 = arith.constant 0 : i32
    %c0_i32_0 = arith.constant 0 : i32
    %c0_i32_1 = arith.constant 0 : i32
    return %c0_i32, %c0_i32_0 : i32, i32
  }
  func.func @transform_2(%arg0: i32) -> (i32, i32) {
    %c0_i32 = arith.constant 0 : i32
    %c0_i32_0 = arith.constant 0 : i32
    %c0_i32_1 = arith.constant 0 : i32
    return %c0_i32, %c0_i32_0 : i32, i32
  }
  func.func @transform_3(%arg0: i32) -> (i32, i32) {
    %c0_i32 = arith.constant 0 : i32
    %c0_i32_0 = arith.constant 0 : i32
    %c0_i32_1 = arith.constant 0 : i32
    return %c0_i32, %c0_i32_0 : i32, i32
  }
}

</mosaic_0001>

<bundles_post_ra>
// kernel: pallas_mm.1
= control target key start
LH: loop header
LB: loop body
LE: loop exit
PB: predicated region body
PF: predicated region fallthrough
CT: control target
= control target key end

     0   :  { %vm187_vm0 = vcmask 1044480   ;;  %s1096_s0 = inlined_call_operand.vmem [shape: bf16[224,10], index: 0, kind: input, shape index: {}]   ;;  %s1097_s1 = inlined_call_operand.vmem [shape: bf16[10,512], index: 1, kind: input, shape index: {}]   ;;  %s1098_s2 = inlined_call_operand.vmem [shape: f32[1,512], index: 2, kind: input, shape index: {}]   ;;  %s1099_s3 = inlined_call_operand.hbm [shape: f32[224,512], index: 3, kind: output, shape index: {}]  }
   0x1   :  { %v704_v0 = vld [vmem:[%s1097_s1] sm:$0xf]  ;;  %v790_v1 = vld [vmem:[%s1097_s1 + $0xc] sm:$0x10]  ;;  %v788_v3 = vld [vmem:[%s1097_s1 + $0x4] sm:$0xf] }
   0x2   :  { %v705_v2 = vor.u32 %v790_v1, %v704_v0  ;;  %v706_v4 = vld [vmem:[%s1097_s1 + $0x10] sm:$0x10]  ;;  %v712_v5 = vld [vmem:[%s1097_s1 + $0x8] sm:$0xf]  ;;  %v791_v7 = vld [vmem:[%s1097_s1 + $0x14] sm:$0x10] }
   0x3   :  { %v709_v6 = vor.u32 %v788_v3, %v706_v4  ;;  %v789_v8 = vld [vmem:[%s1097_s1 + $0xc] sm:$0xf]  ;;  %v714_v9 = vld [vmem:[%s1097_s1 + $0x18] sm:$0x10]  ;;  %v713_v11 = vor.u32 %v791_v7, %v712_v5  ;;  %v774_v13 = vld [vmem:[%s1096_s0] sm:$0xff] }
   0x4   :  { %v189_v10 = vsel %vm187_vm0, %v705_v2, 0  ;;  %v717_v12 = vor.u32 %v789_v8, %v714_v9 }
   0x5   :  { %8 = vsyncpa [#allocation3], 0  ;;  %207 = vmatpush.bf16.msra.mxu0 %v189_v10  ;;  %v192_v14 = vsel %vm187_vm0, %v709_v6, 0  ;;  %vm144_vm1 = vcmask 80896   ;;  %v195_v15 = vsel %vm187_vm0, %v713_v11, 0  ;;  %v775_v17 = vld [vmem:[%s1096_s0 + $0x8] sm:$0xff] }
   0x6   :  { %286 = vmatpush.bf16.msra.mxu1 %v192_v14  ;;  %v198_v16 = vsel %vm187_vm0, %v717_v12, 0  ;;  %365 = vmatpush.bf16.msra.mxu2 %v195_v15  ;;  %v776_v18 = vld [vmem:[%s1096_s0 + $0x10] sm:$0xff]  ;;  %v777_v19 = vld [vmem:[%s1096_s0 + $0x18] sm:$0xff]  ;;  %v778_v20 = vld [vmem:[%s1096_s0 + $0x20] sm:$0xff]  ;;  %s634_s4 = sshll.u32 %s1099_s3, 4  ;;  %s822_s5 = smov 512   ;;  %s635_s4 = int_to_ptr.hbm [resolvable:$true] %s634_s4 }
   0x7   :  { %444 = vmatpush.bf16.msra.mxu3 %v198_v16  ;;  %v779_v21 = vld [vmem:[%s1096_s0 + $0x28] sm:$0xff]  ;;  %v780_v22 = vld [vmem:[%s1096_s0 + $0x30] sm:$0xff]  ;;  %v781_v23 = vld [vmem:[%s1096_s0 + $0x38] sm:$0xff]  ;;  %s823_s6 = smov 32  }
   0x8   :  { %718 = vmatmul.msk.bf16.vlgmr.msra.gmra.mxu0 %vm144_vm1, %v774_v13  ;;  %v48_v24 = vld [vmem:[%s1098_s2] sm:$0xf]  ;;  %v783_v42 = vld [vmem:[%s1096_s0 + $0x48] sm:$0xff]  ;;  %v784_v59 = vld [vmem:[%s1096_s0 + $0x50] sm:$0xff] }
   0x9   :  { %732 = vmatmul.msk.bf16.vlgmr.msra.gmra.mxu1 %vm144_vm1, %v774_v13  ;;  %746 = vmatmul.msk.bf16.vlgmr.msra.gmra.mxu2 %vm144_vm1, %v774_v13  ;;  %v931_v25 = vperm.slane %v48_v24, 0  ;;  %v933_v26 = vperm.slane %v48_v24, 1  ;;  %v782_v27 = vld [vmem:[%s1096_s0 + $0x40] sm:$0xff]  ;;  %v944_v32 = vperm.slane %v48_v24, 2  ;;  %v946_v33 = vperm.slane %v48_v24, 3  ;;  %v785_v12 = vld [vmem:[%s1096_s0 + $0x58] sm:$0xff] }
   0xa   :  { %760 = vmatmul.msk.bf16.vlgmr.msra.gmra.mxu3 %vm144_vm1, %v774_v13 }
  0x18   :  { %719 = vmatmul.msk.bf16.gmra.mxu0 %vm144_vm1, %v775_v17 }
  0x19   :  { %733 = vmatmul.msk.bf16.gmra.mxu1 %vm144_vm1, %v775_v17  ;;  %747 = vmatmul.msk.bf16.gmra.mxu2 %vm144_vm1, %v775_v17 }
  0x1a   :  { %761 = vmatmul.msk.bf16.gmra.mxu3 %vm144_vm1, %v775_v17 }
  0x28   :  { %720 = vmatmul.msk.bf16.gmra.mxu0 %vm144_vm1, %v776_v18 }
  0x29   :  { %734 = vmatmul.msk.bf16.gmra.mxu1 %vm144_vm1, %v776_v18  ;;  %748 = vmatmul.msk.bf16.gmra.mxu2 %vm144_vm1, %v776_v18 }
  0x2a   :  { %762 = vmatmul.msk.bf16.gmra.mxu3 %vm144_vm1, %v776_v18 }
  0x38   :  { %721 = vmatmul.msk.bf16.gmra.mxu0 %vm144_vm1, %v777_v19 }
  0x39   :  { %735 = vmatmul.msk.bf16.gmra.mxu1 %vm144_vm1, %v777_v19  ;;  %749 = vmatmul.msk.bf16.gmra.mxu2 %vm144_vm1, %v777_v19 }
  0x3a   :  { %763 = vmatmul.msk.bf16.gmra.mxu3 %vm144_vm1, %v777_v19 }
  0x48   :  { %722 = vmatmul.msk.bf16.gmra.mxu0 %vm144_vm1, %v778_v20 }
  0x49   :  { %736 = vmatmul.msk.bf16.gmra.mxu1 %vm144_vm1, %v778_v20  ;;  %750 = vmatmul.msk.bf16.gmra.mxu2 %vm144_vm1, %v778_v20 }
  0x4a   :  { %764 = vmatmul.msk.bf16.gmra.mxu3 %vm144_vm1, %v778_v20 }
  0x58   :  { %723 = vmatmul.msk.bf16.gmra.mxu0 %vm144_vm1, %v779_v21 }
  0x59   :  { %737 = vmatmul.msk.bf16.gmra.mxu1 %vm144_vm1, %v779_v21  ;;  %751 = vmatmul.msk.bf16.gmra.mxu2 %vm144_vm1, %v779_v21 }
  0x5a   :  { %765 = vmatmul.msk.bf16.gmra.mxu3 %vm144_vm1, %v779_v21 }
  0x68   :  { %724 = vmatmul.msk.bf16.gmra.mxu0 %vm144_vm1, %v780_v22 }
  0x69   :  { %738 = vmatmul.msk.bf16.gmra.mxu1 %vm144_vm1, %v780_v22  ;;  %752 = vmatmul.msk.bf16.gmra.mxu2 %vm144_vm1, %v780_v22 }
  0x6a   :  { %766 = vmatmul.msk.bf16.gmra.mxu3 %vm144_vm1, %v780_v22 }
  0x78   :  { %725 = vmatmul.msk.bf16.gmra.mxu0 %vm144_vm1, %v781_v23 }
  0x79   :  { %739 = vmatmul.msk.bf16.gmra.mxu1 %vm144_vm1, %v781_v23  ;;  %753 = vmatmul.msk.bf16.gmra.mxu2 %vm144_vm1, %v781_v23 }
  0x7a   :  { %767 = vmatmul.msk.bf16.gmra.mxu3 %vm144_vm1, %v781_v23 }
  0x85   :  { %v209_v28 = vpop.f32.mrf.mxu0 }
  0x86   :  { %v210_v29 = vadd.f32 %v209_v28, %v931_v25  ;;  %v288_v30 = vpop.f32.mrf.mxu1 }
  0x87   :  { %v289_v31 = vadd.f32 %v288_v30, %v933_v26 }
  0x88   :  { %516 = vst [vmem:[#allocation2] sm:$0xff] %v210_v29  ;;  %726 = vmatmul.msk.bf16.gmra.mxu0 %vm144_vm1, %v782_v27 }
  0x89   :  { %517 = vst [vmem:[#allocation2 + $0x8] sm:$0xff] %v289_v31  ;;  %740 = vmatmul.msk.bf16.gmra.mxu1 %vm144_vm1, %v782_v27  ;;  %754 = vmatmul.msk.bf16.gmra.mxu2 %vm144_vm1, %v782_v27  ;;  %v786_v31 = vld [vmem:[%s1096_s0 + $0x60] sm:$0xff] }
  0x8a   :  { %768 = vmatmul.msk.bf16.gmra.mxu3 %vm144_vm1, %v782_v27 }
  0x8c   :  { %v367_v34 = vpop.f32.mrf.mxu2 }
  0x8d   :  { %v446_v35 = vpop.f32.mrf.mxu3  ;;  %v368_v36 = vadd.f32 %v367_v34, %v944_v32  ;;  %v211_v38 = vpop.f32.mrf.mxu0 }
  0x8e   :  { %v447_v37 = vadd.f32 %v446_v35, %v946_v33  ;;  %v290_v39 = vpop.f32.mrf.mxu1  ;;  %v212_v40 = vadd.f32 %v211_v38, %v931_v25 }
  0x8f   :  { %v291_v41 = vadd.f32 %v290_v39, %v933_v26  ;;  %518 = vst [vmem:[#allocation2 + $0x10] sm:$0xff] %v368_v36 }
  0x90   :  { %519 = vst [vmem:[#allocation2 + $0x18] sm:$0xff] %v447_v37 }
  0x91   :  { %520 = vst [vmem:[#allocation2 + $0x20] sm:$0xff] %v212_v40 }
  0x92   :  { %521 = vst [vmem:[#allocation2 + $0x28] sm:$0xff] %v291_v41 }
  0x94   :  { %v369_v43 = vpop.f32.mrf.mxu2 }
  0x95   :  { %v448_v44 = vpop.f32.mrf.mxu3  ;;  %v370_v45 = vadd.f32 %v369_v43, %v944_v32  ;;  %v214_v47 = vpop.f32.mrf.mxu0 }
  0x96   :  { %v449_v46 = vadd.f32 %v448_v44, %v946_v33  ;;  %v293_v48 = vpop.f32.mrf.mxu1  ;;  %v215_v49 = vadd.f32 %v214_v47, %v931_v25 }
  0x97   :  { %v294_v50 = vadd.f32 %v293_v48, %v933_v26  ;;  %522 = vst [vmem:[#allocation2 + $0x30] sm:$0xff] %v370_v45 }
  0x98   :  { %727 = vmatmul.msk.bf16.gmra.mxu0 %vm144_vm1, %v783_v42  ;;  %523 = vst [vmem:[#allocation2 + $0x38] sm:$0xff] %v449_v46 }
  0x99   :  { %741 = vmatmul.msk.bf16.gmra.mxu1 %vm144_vm1, %v783_v42  ;;  %524 = vst [vmem:[#allocation2 + $0x40] sm:$0xff] %v215_v49  ;;  %755 = vmatmul.msk.bf16.gmra.mxu2 %vm144_vm1, %v783_v42 }
  0x9a   :  { %769 = vmatmul.msk.bf16.gmra.mxu3 %vm144_vm1, %v783_v42  ;;  %525 = vst [vmem:[#allocation2 + $0x48] sm:$0xff] %v294_v50  ;;  %v787_v50 = vld [vmem:[%s1096_s0 + $0x68] sm:$0xff]  ;;  %s821_s0 = smov [#allocation2]  }
  0x9b   :  { %s632_s29 = sshll.u32 %s821_s0, 4  ;;  %s633_s29 = int_to_ptr.vmem [resolvable:$true] %s632_s29 }
  0x9c   :  { %v372_v51 = vpop.f32.mrf.mxu2 }
  0x9d   :  { %v451_v52 = vpop.f32.mrf.mxu3  ;;  %v373_v53 = vadd.f32 %v372_v51, %v944_v32  ;;  %v216_v55 = vpop.f32.mrf.mxu0 }
  0x9e   :  { %v452_v54 = vadd.f32 %v451_v52, %v946_v33  ;;  %v295_v56 = vpop.f32.mrf.mxu1  ;;  %v217_v57 = vadd.f32 %v216_v55, %v931_v25 }
  0x9f   :  { %v296_v58 = vadd.f32 %v295_v56, %v933_v26  ;;  %526 = vst [vmem:[#allocation2 + $0x50] sm:$0xff] %v373_v53 }
  0xa0   :  { %527 = vst [vmem:[#allocation2 + $0x58] sm:$0xff] %v452_v54 }
  0xa1   :  { %528 = vst [vmem:[#allocation2 + $0x60] sm:$0xff] %v217_v57 }
  0xa2   :  { %529 = vst [vmem:[#allocation2 + $0x68] sm:$0xff] %v296_v58 }
  0xa4   :  { %v374_v60 = vpop.f32.mrf.mxu2 }
  0xa5   :  { %v453_v61 = vpop.f32.mrf.mxu3  ;;  %v375_v62 = vadd.f32 %v374_v60, %v944_v32  ;;  %v219_v0 = vpop.f32.mrf.mxu0 }
  0xa6   :  { %v454_v63 = vadd.f32 %v453_v61, %v946_v33  ;;  %v298_v1 = vpop.f32.mrf.mxu1  ;;  %v220_v2 = vadd.f32 %v219_v0, %v931_v25 }
  0xa7   :  { %v299_v3 = vadd.f32 %v298_v1, %v933_v26  ;;  %530 = vst [vmem:[#allocation2 + $0x70] sm:$0xff] %v375_v62 }
  0xa8   :  { %728 = vmatmul.msk.bf16.gmra.mxu0 %vm144_vm1, %v784_v59  ;;  %531 = vst [vmem:[#allocation2 + $0x78] sm:$0xff] %v454_v63 }
  0xa9   :  { %742 = vmatmul.msk.bf16.gmra.mxu1 %vm144_vm1, %v784_v59  ;;  %532 = vst [vmem:[#allocation2 + $0x80] sm:$0xff] %v220_v2  ;;  %756 = vmatmul.msk.bf16.gmra.mxu2 %vm144_vm1, %v784_v59 }
  0xaa   :  { %770 = vmatmul.msk.bf16.gmra.mxu3 %vm144_vm1, %v784_v59  ;;  %533 = vst [vmem:[#allocation2 + $0x88] sm:$0xff] %v299_v3 }
  0xac   :  { %v377_v4 = vpop.f32.mrf.mxu2 }
  0xad   :  { %v456_v5 = vpop.f32.mrf.mxu3  ;;  %v378_v6 = vadd.f32 %v377_v4, %v944_v32  ;;  %v221_v8 = vpop.f32.mrf.mxu0 }
  0xae   :  { %v457_v7 = vadd.f32 %v456_v5, %v946_v33  ;;  %v300_v9 = vpop.f32.mrf.mxu1  ;;  %v222_v10 = vadd.f32 %v221_v8, %v931_v25 }
  0xaf   :  { %v301_v11 = vadd.f32 %v300_v9, %v933_v26  ;;  %534 = vst [vmem:[#allocation2 + $0x90] sm:$0xff] %v378_v6 }
  0xb0   :  { %535 = vst [vmem:[#allocation2 + $0x98] sm:$0xff] %v457_v7 }
  0xb1   :  { %536 = vst [vmem:[#allocation2 + $0xa0] sm:$0xff] %v222_v10 }
  0xb2   :  { %537 = vst [vmem:[#allocation2 + $0xa8] sm:$0xff] %v301_v11 }
  0xb4   :  { %v379_v13 = vpop.f32.mrf.mxu2 }
  0xb5   :  { %v458_v14 = vpop.f32.mrf.mxu3  ;;  %v380_v15 = vadd.f32 %v379_v13, %v944_v32  ;;  %v224_v17 = vpop.f32.mrf.mxu0 }
  0xb6   :  { %v459_v16 = vadd.f32 %v458_v14, %v946_v33  ;;  %v303_v18 = vpop.f32.mrf.mxu1  ;;  %v225_v19 = vadd.f32 %v224_v17, %v931_v25 }
  0xb7   :  { %v304_v20 = vadd.f32 %v303_v18, %v933_v26  ;;  %538 = vst [vmem:[#allocation2 + $0xb0] sm:$0xff] %v380_v15 }
  0xb8   :  { %729 = vmatmul.msk.bf16.gmra.mxu0 %vm144_vm1, %v785_v12  ;;  %539 = vst [vmem:[#allocation2 + $0xb8] sm:$0xff] %v459_v16 }
  0xb9   :  { %743 = vmatmul.msk.bf16.gmra.mxu1 %vm144_vm1, %v785_v12  ;;  %540 = vst [vmem:[#allocation2 + $0xc0] sm:$0xff] %v225_v19  ;;  %757 = vmatmul.msk.bf16.gmra.mxu2 %vm144_vm1, %v785_v12 }
  0xba   :  { %771 = vmatmul.msk.bf16.gmra.mxu3 %vm144_vm1, %v785_v12  ;;  %541 = vst [vmem:[#allocation2 + $0xc8] sm:$0xff] %v304_v20 }
  0xbc   :  { %v382_v21 = vpop.f32.mrf.mxu2 }
  0xbd   :  { %v461_v22 = vpop.f32.mrf.mxu3  ;;  %v383_v23 = vadd.f32 %v382_v21, %v944_v32  ;;  %v226_v27 = vpop.f32.mrf.mxu0 }
  0xbe   :  { %v462_v24 = vadd.f32 %v461_v22, %v946_v33  ;;  %v305_v28 = vpop.f32.mrf.mxu1  ;;  %v227_v29 = vadd.f32 %v226_v27, %v931_v25 }
  0xbf   :  { %v306_v30 = vadd.f32 %v305_v28, %v933_v26  ;;  %542 = vst [vmem:[#allocation2 + $0xd0] sm:$0xff] %v383_v23 }
  0xc0   :  { %543 = vst [vmem:[#allocation2 + $0xd8] sm:$0xff] %v462_v24 }
  0xc1   :  { %544 = vst [vmem:[#allocation2 + $0xe0] sm:$0xff] %v227_v29 }
  0xc2   :  { %545 = vst [vmem:[#allocation2 + $0xe8] sm:$0xff] %v306_v30 }
  0xc4   :  { %v384_v34 = vpop.f32.mrf.mxu2 }
  0xc5   :  { %v463_v35 = vpop.f32.mrf.mxu3  ;;  %v385_v36 = vadd.f32 %v384_v34, %v944_v32  ;;  %v229_v38 = vpop.f32.mrf.mxu0 }
  0xc6   :  { %v464_v37 = vadd.f32 %v463_v35, %v946_v33  ;;  %v308_v39 = vpop.f32.mrf.mxu1  ;;  %v230_v40 = vadd.f32 %v229_v38, %v931_v25 }
  0xc7   :  { %v309_v41 = vadd.f32 %v308_v39, %v933_v26  ;;  %546 = vst [vmem:[#allocation2 + $0xf0] sm:$0xff] %v385_v36 }
  0xc8   :  { %730 = vmatmul.msk.bf16.gmra.mxu0 %vm144_vm1, %v786_v31  ;;  %547 = vst [vmem:[#allocation2 + $0xf8] sm:$0xff] %v464_v37 }
  0xc9   :  { %744 = vmatmul.msk.bf16.gmra.mxu1 %vm144_vm1, %v786_v31  ;;  %548 = vst [vmem:[#allocation2 + $0x100] sm:$0xff] %v230_v40  ;;  %758 = vmatmul.msk.bf16.gmra.mxu2 %vm144_vm1, %v786_v31 }
  0xca   :  { %772 = vmatmul.msk.bf16.gmra.mxu3 %vm144_vm1, %v786_v31  ;;  %549 = vst [vmem:[#allocation2 + $0x108] sm:$0xff] %v309_v41 }
  0xcc   :  { %v387_v42 = vpop.f32.mrf.mxu2 }
  0xcd   :  { %v466_v43 = vpop.f32.mrf.mxu3  ;;  %v388_v44 = vadd.f32 %v387_v42, %v944_v32  ;;  %v231_v46 = vpop.f32.mrf.mxu0 }
  0xce   :  { %v467_v45 = vadd.f32 %v466_v43, %v946_v33  ;;  %v310_v47 = vpop.f32.mrf.mxu1  ;;  %v232_v48 = vadd.f32 %v231_v46, %v931_v25 }
  0xcf   :  { %v311_v49 = vadd.f32 %v310_v47, %v933_v26  ;;  %550 = vst [vmem:[#allocation2 + $0x110] sm:$0xff] %v388_v44 }
  0xd0   :  { %551 = vst [vmem:[#allocation2 + $0x118] sm:$0xff] %v467_v45 }
  0xd1   :  { %552 = vst [vmem:[#allocation2 + $0x120] sm:$0xff] %v232_v48 }
  0xd2   :  { %553 = vst [vmem:[#allocation2 + $0x128] sm:$0xff] %v311_v49 }
  0xd4   :  { %v389_v51 = vpop.f32.mrf.mxu2 }
  0xd5   :  { %v468_v52 = vpop.f32.mrf.mxu3  ;;  %v390_v53 = vadd.f32 %v389_v51, %v944_v32  ;;  %v234_v55 = vpop.f32.mrf.mxu0 }
  0xd6   :  { %v469_v54 = vadd.f32 %v468_v52, %v946_v33  ;;  %v313_v56 = vpop.f32.mrf.mxu1  ;;  %v235_v57 = vadd.f32 %v234_v55, %v931_v25 }
  0xd7   :  { %v314_v58 = vadd.f32 %v313_v56, %v933_v26  ;;  %554 = vst [vmem:[#allocation2 + $0x130] sm:$0xff] %v390_v53 }
  0xd8   :  { %731 = vmatmul.msk.bf16.gmra.mxu0 %vm144_vm1, %v787_v50  ;;  %555 = vst [vmem:[#allocation2 + $0x138] sm:$0xff] %v469_v54 }
  0xd9   :  { %745 = vmatmul.msk.bf16.gmra.mxu1 %vm144_vm1, %v787_v50  ;;  %556 = vst [vmem:[#allocation2 + $0x140] sm:$0xff] %v235_v57  ;;  %759 = vmatmul.msk.bf16.gmra.mxu2 %vm144_vm1, %v787_v50 }
  0xda   :  { %773 = vmatmul.msk.bf16.gmra.mxu3 %vm144_vm1, %v787_v50  ;;  %557 = vst [vmem:[#allocation2 + $0x148] sm:$0xff] %v314_v58 }
  0xdc   :  { %v392_v59 = vpop.f32.mrf.mxu2 }
  0xdd   :  { %v471_v60 = vpop.f32.mrf.mxu3  ;;  %v393_v61 = vadd.f32 %v392_v59, %v944_v32  ;;  %v236_v63 = vpop.f32.mrf.mxu0 }
  0xde   :  { %v472_v62 = vadd.f32 %v471_v60, %v946_v33  ;;  %v315_v0 = vpop.f32.mrf.mxu1  ;;  %v237_v1 = vadd.f32 %v236_v63, %v931_v25 }
  0xdf   :  { %v316_v2 = vadd.f32 %v315_v0, %v933_v26  ;;  %558 = vst [vmem:[#allocation2 + $0x150] sm:$0xff] %v393_v61 }
  0xe0   :  { %559 = vst [vmem:[#allocation2 + $0x158] sm:$0xff] %v472_v62 }
  0xe1   :  { %560 = vst [vmem:[#allocation2 + $0x160] sm:$0xff] %v237_v1 }
  0xe2   :  { %561 = vst [vmem:[#allocation2 + $0x168] sm:$0xff] %v316_v2 }
  0xe4   :  { %v394_v3 = vpop.f32.mrf.mxu2 }
  0xe5   :  { %v473_v4 = vpop.f32.mrf.mxu3  ;;  %v395_v5 = vadd.f32 %v394_v3, %v944_v32  ;;  %v239_v7 = vpop.f32.mrf.mxu0 }
  0xe6   :  { %v474_v6 = vadd.f32 %v473_v4, %v946_v33  ;;  %v318_v8 = vpop.f32.mrf.mxu1  ;;  %v240_v9 = vadd.f32 %v239_v7, %v931_v25 }
  0xe7   :  { %v319_v10 = vadd.f32 %v318_v8, %v933_v26  ;;  %562 = vst [vmem:[#allocation2 + $0x170] sm:$0xff] %v395_v5 }
  0xe8   :  { %563 = vst [vmem:[#allocation2 + $0x178] sm:$0xff] %v474_v6 }
  0xe9   :  { %564 = vst [vmem:[#allocation2 + $0x180] sm:$0xff] %v240_v9 }
  0xea   :  { %565 = vst [vmem:[#allocation2 + $0x188] sm:$0xff] %v319_v10 }
  0xec   :  { %v397_v11 = vpop.f32.mrf.mxu2 }
  0xed   :  { %v476_v12 = vpop.f32.mrf.mxu3  ;;  %v398_v13 = vadd.f32 %v397_v11, %v944_v32  ;;  %v241_v15 = vpop.f32.mrf.mxu0 }
  0xee   :  { %v477_v14 = vadd.f32 %v476_v12, %v946_v33  ;;  %v320_v16 = vpop.f32.mrf.mxu1  ;;  %v242_v17 = vadd.f32 %v241_v15, %v931_v25 }
  0xef   :  { %v321_v18 = vadd.f32 %v320_v16, %v933_v26  ;;  %566 = vst [vmem:[#allocation2 + $0x190] sm:$0xff] %v398_v13 }
  0xf0   :  { %567 = vst [vmem:[#allocation2 + $0x198] sm:$0xff] %v477_v14 }
  0xf1   :  { %568 = vst [vmem:[#allocation2 + $0x1a0] sm:$0xff] %v242_v17 }
  0xf2   :  { %569 = vst [vmem:[#allocation2 + $0x1a8] sm:$0xff] %v321_v18 }
  0xf4   :  { %v399_v19 = vpop.f32.mrf.mxu2 }
  0xf5   :  { %v478_v20 = vpop.f32.mrf.mxu3  ;;  %v400_v21 = vadd.f32 %v399_v19, %v944_v32  ;;  %v244_v23 = vpop.f32.mrf.mxu0 }
  0xf6   :  { %v479_v22 = vadd.f32 %v478_v20, %v946_v33  ;;  %v323_v24 = vpop.f32.mrf.mxu1  ;;  %v245_v27 = vadd.f32 %v244_v23, %v931_v25 }
  0xf7   :  { %v324_v28 = vadd.f32 %v323_v24, %v933_v26  ;;  %570 = vst [vmem:[#allocation2 + $0x1b0] sm:$0xff] %v400_v21 }
  0xf8   :  { %571 = vst [vmem:[#allocation2 + $0x1b8] sm:$0xff] %v479_v22 }
  0xf9   :  { %572 = vst [vmem:[#allocation2 + $0x1c0] sm:$0xff] %v245_v27 }
  0xfa   :  { %573 = vst [vmem:[#allocation2 + $0x1c8] sm:$0xff] %v324_v28 }
  0xfc   :  { %v402_v29 = vpop.f32.mrf.mxu2 }
  0xfd   :  { %v481_v30 = vpop.f32.mrf.mxu3  ;;  %v403_v31 = vadd.f32 %v402_v29, %v944_v32  ;;  %v246_v35 = vpop.f32.mrf.mxu0 }
  0xfe   :  { %v482_v34 = vadd.f32 %v481_v30, %v946_v33  ;;  %v325_v36 = vpop.f32.mrf.mxu1  ;;  %v247_v37 = vadd.f32 %v246_v35, %v931_v25 }
  0xff   :  { %v326_v38 = vadd.f32 %v325_v36, %v933_v26  ;;  %574 = vst [vmem:[#allocation2 + $0x1d0] sm:$0xff] %v403_v31 }
 0x100   :  { %575 = vst [vmem:[#allocation2 + $0x1d8] sm:$0xff] %v482_v34 }
 0x101   :  { %576 = vst [vmem:[#allocation2 + $0x1e0] sm:$0xff] %v247_v37 }
 0x102   :  { %577 = vst [vmem:[#allocation2 + $0x1e8] sm:$0xff] %v326_v38 }
 0x104   :  { %v404_v39 = vpop.f32.mrf.mxu2 }
 0x105   :  { %v483_v40 = vpop.f32.mrf.mxu3  ;;  %v405_v41 = vadd.f32 %v404_v39, %v944_v32  ;;  %v249_v43 = vpop.f32.mrf.mxu0 }
 0x106   :  { %v484_v42 = vadd.f32 %v483_v40, %v946_v33  ;;  %v328_v44 = vpop.f32.mrf.mxu1  ;;  %v250_v45 = vadd.f32 %v249_v43, %v931_v25 }
 0x107   :  { %v329_v46 = vadd.f32 %v328_v44, %v933_v26  ;;  %578 = vst [vmem:[#allocation2 + $0x1f0] sm:$0xff] %v405_v41 }
 0x108   :  { %579 = vst [vmem:[#allocation2 + $0x1f8] sm:$0xff] %v484_v42 }
 0x109   :  { %580 = vst [vmem:[#allocation2 + $0x200] sm:$0xff] %v250_v45 }
 0x10a   :  { %581 = vst [vmem:[#allocation2 + $0x208] sm:$0xff] %v329_v46 }
 0x10c   :  { %v407_v47 = vpop.f32.mrf.mxu2 }
 0x10d   :  { %v486_v48 = vpop.f32.mrf.mxu3  ;;  %v408_v49 = vadd.f32 %v407_v47, %v944_v32  ;;  %v251_v51 = vpop.f32.mrf.mxu0 }
 0x10e   :  { %v487_v50 = vadd.f32 %v486_v48, %v946_v33  ;;  %v330_v52 = vpop.f32.mrf.mxu1  ;;  %v252_v53 = vadd.f32 %v251_v51, %v931_v25 }
 0x10f   :  { %v331_v54 = vadd.f32 %v330_v52, %v933_v26  ;;  %582 = vst [vmem:[#allocation2 + $0x210] sm:$0xff] %v408_v49 }
 0x110   :  { %583 = vst [vmem:[#allocation2 + $0x218] sm:$0xff] %v487_v50 }
 0x111   :  { %584 = vst [vmem:[#allocation2 + $0x220] sm:$0xff] %v252_v53 }
 0x112   :  { %585 = vst [vmem:[#allocation2 + $0x228] sm:$0xff] %v331_v54 }
 0x114   :  { %v409_v55 = vpop.f32.mrf.mxu2 }
 0x115   :  { %v488_v56 = vpop.f32.mrf.mxu3  ;;  %v410_v57 = vadd.f32 %v409_v55, %v944_v32  ;;  %v254_v59 = vpop.f32.mrf.mxu0 }
 0x116   :  { %v489_v58 = vadd.f32 %v488_v56, %v946_v33  ;;  %v333_v60 = vpop.f32.mrf.mxu1  ;;  %v255_v61 = vadd.f32 %v254_v59, %v931_v25 }
 0x117   :  { %v334_v62 = vadd.f32 %v333_v60, %v933_v26  ;;  %586 = vst [vmem:[#allocation2 + $0x230] sm:$0xff] %v410_v57 }
 0x118   :  { %587 = vst [vmem:[#allocation2 + $0x238] sm:$0xff] %v489_v58 }
 0x119   :  { %588 = vst [vmem:[#allocation2 + $0x240] sm:$0xff] %v255_v61 }
 0x11a   :  { %589 = vst [vmem:[#allocation2 + $0x248] sm:$0xff] %v334_v62 }
 0x11c   :  { %v412_v63 = vpop.f32.mrf.mxu2 }
 0x11d   :  { %v491_v0 = vpop.f32.mrf.mxu3  ;;  %v413_v1 = vadd.f32 %v412_v63, %v944_v32  ;;  %v256_v3 = vpop.f32.mrf.mxu0 }
 0x11e   :  { %v492_v2 = vadd.f32 %v491_v0, %v946_v33  ;;  %v335_v4 = vpop.f32.mrf.mxu1  ;;  %v257_v5 = vadd.f32 %v256_v3, %v931_v25 }
 0x11f   :  { %v336_v6 = vadd.f32 %v335_v4, %v933_v26  ;;  %590 = vst [vmem:[#allocation2 + $0x250] sm:$0xff] %v413_v1 }
 0x120   :  { %591 = vst [vmem:[#allocation2 + $0x258] sm:$0xff] %v492_v2 }
 0x121   :  { %592 = vst [vmem:[#allocation2 + $0x260] sm:$0xff] %v257_v5 }
 0x122   :  { %593 = vst [vmem:[#allocation2 + $0x268] sm:$0xff] %v336_v6 }
 0x124   :  { %v414_v7 = vpop.f32.mrf.mxu2 }
 0x125   :  { %v493_v8 = vpop.f32.mrf.mxu3  ;;  %v415_v9 = vadd.f32 %v414_v7, %v944_v32  ;;  %v259_v11 = vpop.f32.mrf.mxu0 }
 0x126   :  { %v494_v10 = vadd.f32 %v493_v8, %v946_v33  ;;  %v338_v12 = vpop.f32.mrf.mxu1  ;;  %v260_v13 = vadd.f32 %v259_v11, %v931_v25 }
 0x127   :  { %v339_v14 = vadd.f32 %v338_v12, %v933_v26  ;;  %594 = vst [vmem:[#allocation2 + $0x270] sm:$0xff] %v415_v9 }
 0x128   :  { %595 = vst [vmem:[#allocation2 + $0x278] sm:$0xff] %v494_v10 }
 0x129   :  { %596 = vst [vmem:[#allocation2 + $0x280] sm:$0xff] %v260_v13 }
 0x12a   :  { %597 = vst [vmem:[#allocation2 + $0x288] sm:$0xff] %v339_v14 }
 0x12c   :  { %v417_v15 = vpop.f32.mrf.mxu2 }
 0x12d   :  { %v496_v16 = vpop.f32.mrf.mxu3  ;;  %v418_v17 = vadd.f32 %v417_v15, %v944_v32  ;;  %v261_v19 = vpop.f32.mrf.mxu0 }
 0x12e   :  { %v497_v18 = vadd.f32 %v496_v16, %v946_v33  ;;  %v340_v20 = vpop.f32.mrf.mxu1  ;;  %v262_v21 = vadd.f32 %v261_v19, %v931_v25 }
 0x12f   :  { %v341_v22 = vadd.f32 %v340_v20, %v933_v26  ;;  %598 = vst [vmem:[#allocation2 + $0x290] sm:$0xff] %v418_v17 }
 0x130   :  { %599 = vst [vmem:[#allocation2 + $0x298] sm:$0xff] %v497_v18 }
 0x131   :  { %600 = vst [vmem:[#allocation2 + $0x2a0] sm:$0xff] %v262_v21 }
 0x132   :  { %601 = vst [vmem:[#allocation2 + $0x2a8] sm:$0xff] %v341_v22 }
 0x134   :  { %v419_v23 = vpop.f32.mrf.mxu2 }
 0x135   :  { %v498_v24 = vpop.f32.mrf.mxu3  ;;  %v420_v27 = vadd.f32 %v419_v23, %v944_v32  ;;  %v264_v29 = vpop.f32.mrf.mxu0 }
 0x136   :  { %v499_v28 = vadd.f32 %v498_v24, %v946_v33  ;;  %v343_v30 = vpop.f32.mrf.mxu1  ;;  %v265_v31 = vadd.f32 %v264_v29, %v931_v25 }
 0x137   :  { %v344_v34 = vadd.f32 %v343_v30, %v933_v26  ;;  %602 = vst [vmem:[#allocation2 + $0x2b0] sm:$0xff] %v420_v27 }
 0x138   :  { %603 = vst [vmem:[#allocation2 + $0x2b8] sm:$0xff] %v499_v28 }
 0x139   :  { %604 = vst [vmem:[#allocation2 + $0x2c0] sm:$0xff] %v265_v31 }
 0x13a   :  { %605 = vst [vmem:[#allocation2 + $0x2c8] sm:$0xff] %v344_v34 }
 0x13c   :  { %v422_v35 = vpop.f32.mrf.mxu2 }
 0x13d   :  { %v501_v36 = vpop.f32.mrf.mxu3  ;;  %v423_v37 = vadd.f32 %v422_v35, %v944_v32  ;;  %v266_v39 = vpop.f32.mrf.mxu0 }
 0x13e   :  { %v502_v38 = vadd.f32 %v501_v36, %v946_v33  ;;  %v345_v40 = vpop.f32.mrf.mxu1  ;;  %v267_v41 = vadd.f32 %v266_v39, %v931_v25 }
 0x13f   :  { %v346_v42 = vadd.f32 %v345_v40, %v933_v26  ;;  %606 = vst [vmem:[#allocation2 + $0x2d0] sm:$0xff] %v423_v37 }
 0x140   :  { %607 = vst [vmem:[#allocation2 + $0x2d8] sm:$0xff] %v502_v38 }
 0x141   :  { %608 = vst [vmem:[#allocation2 + $0x2e0] sm:$0xff] %v267_v41 }
 0x142   :  { %609 = vst [vmem:[#allocation2 + $0x2e8] sm:$0xff] %v346_v42 }
 0x144   :  { %v424_v43 = vpop.f32.mrf.mxu2 }
 0x145   :  { %v503_v44 = vpop.f32.mrf.mxu3  ;;  %v425_v45 = vadd.f32 %v424_v43, %v944_v32  ;;  %v269_v47 = vpop.f32.mrf.mxu0 }
 0x146   :  { %v504_v46 = vadd.f32 %v503_v44, %v946_v33  ;;  %v348_v48 = vpop.f32.mrf.mxu1  ;;  %v270_v49 = vadd.f32 %v269_v47, %v931_v25 }
 0x147   :  { %v349_v50 = vadd.f32 %v348_v48, %v933_v26  ;;  %610 = vst [vmem:[#allocation2 + $0x2f0] sm:$0xff] %v425_v45 }
 0x148   :  { %611 = vst [vmem:[#allocation2 + $0x2f8] sm:$0xff] %v504_v46 }
 0x149   :  { %612 = vst [vmem:[#allocation2 + $0x300] sm:$0xff] %v270_v49 }
 0x14a   :  { %613 = vst [vmem:[#allocation2 + $0x308] sm:$0xff] %v349_v50 }
 0x14c   :  { %v427_v51 = vpop.f32.mrf.mxu2 }
 0x14d   :  { %v506_v52 = vpop.f32.mrf.mxu3  ;;  %v428_v53 = vadd.f32 %v427_v51, %v944_v32  ;;  %v271_v55 = vpop.f32.mrf.mxu0 }
 0x14e   :  { %v507_v54 = vadd.f32 %v506_v52, %v946_v33  ;;  %v350_v56 = vpop.f32.mrf.mxu1  ;;  %v272_v57 = vadd.f32 %v271_v55, %v931_v25 }
 0x14f   :  { %v351_v58 = vadd.f32 %v350_v56, %v933_v26  ;;  %614 = vst [vmem:[#allocation2 + $0x310] sm:$0xff] %v428_v53 }
 0x150   :  { %615 = vst [vmem:[#allocation2 + $0x318] sm:$0xff] %v507_v54 }
 0x151   :  { %616 = vst [vmem:[#allocation2 + $0x320] sm:$0xff] %v272_v57 }
 0x152   :  { %617 = vst [vmem:[#allocation2 + $0x328] sm:$0xff] %v351_v58 }
 0x154   :  { %v429_v59 = vpop.f32.mrf.mxu2 }
 0x155   :  { %v508_v60 = vpop.f32.mrf.mxu3  ;;  %v430_v61 = vadd.f32 %v429_v59, %v944_v32  ;;  %v274_v63 = vpop.f32.mrf.mxu0 }
 0x156   :  { %v509_v62 = vadd.f32 %v508_v60, %v946_v33  ;;  %v353_v0 = vpop.f32.mrf.mxu1  ;;  %v275_v1 = vadd.f32 %v274_v63, %v931_v25 }
 0x157   :  { %v354_v2 = vadd.f32 %v353_v0, %v933_v26  ;;  %618 = vst [vmem:[#allocation2 + $0x330] sm:$0xff] %v430_v61 }
 0x158   :  { %619 = vst [vmem:[#allocation2 + $0x338] sm:$0xff] %v509_v62 }
 0x159   :  { %620 = vst [vmem:[#allocation2 + $0x340] sm:$0xff] %v275_v1 }
 0x15a   :  { %621 = vst [vmem:[#allocation2 + $0x348] sm:$0xff] %v354_v2 }
 0x15c   :  { %v432_v3 = vpop.f32.mrf.mxu2 }
 0x15d   :  { %v511_v4 = vpop.f32.mrf.mxu3  ;;  %v433_v5 = vadd.f32 %v432_v3, %v944_v32  ;;  %v276_v7 = vpop.f32.mrf.mxu0 }
 0x15e   :  { %v512_v6 = vadd.f32 %v511_v4, %v946_v33  ;;  %v355_v8 = vpop.f32.mrf.mxu1  ;;  %v277_v9 = vadd.f32 %v276_v7, %v931_v25 }
 0x15f   :  { %v356_v10 = vadd.f32 %v355_v8, %v933_v26  ;;  %622 = vst [vmem:[#allocation2 + $0x350] sm:$0xff] %v433_v5 }
 0x160   :  { %623 = vst [vmem:[#allocation2 + $0x358] sm:$0xff] %v512_v6 }
 0x161   :  { %624 = vst [vmem:[#allocation2 + $0x360] sm:$0xff] %v277_v9 }
 0x162   :  { %625 = vst [vmem:[#allocation2 + $0x368] sm:$0xff] %v356_v10 }
 0x164   :  { %v434_v11 = vpop.f32.mrf.mxu2 }
 0x165   :  { %v513_v12 = vpop.f32.mrf.mxu3  ;;  %v435_v13 = vadd.f32 %v434_v11, %v944_v32 }
 0x166   :  { %v514_v14 = vadd.f32 %v513_v12, %v946_v33 }
 0x167   :  { %626 = vst [vmem:[#allocation2 + $0x370] sm:$0xff] %v435_v13 }
 0x168   :  { %627 = vst [vmem:[#allocation2 + $0x378] sm:$0xff] %v514_v14 }
 0x169   :  { %640 = dma.vmem_to_hbm [thread:$0]  %s633_s29, 14336, %s635_s4, [#allocation3], %s822_s5, %s822_s5, %s823_s6  }
 0x16a   :  { %819 = dma.done.wait [#allocation3], 14336  }
 0x16b   :  { %820 = vsyncadd [#allocation3], 4294952960 }
 0x16c   :  { %645 = vsyncpa [#allocation3], 1 }

</bundles_post_ra>
